<compile_context>
chip_gen: v7x
topology: tpu7x:2x2x1
jax: 0.10.0
libtpu: 0.0.40
codegen_flags: <defaults>
</compile_context>

<pallas_src>
import functools
import math

import jax
import jax.numpy as jnp
from jax.experimental import pallas as pl
from jax.experimental.pallas import tpu as pltpu


# ----------------------------------------------------------------------------
# Pallas kernel: shifted per-lane sum / sum-of-squares reduction.
# ----------------------------------------------------------------------------
def _moments_kernel(x_ref, shift_ref, sum_ref, sq_ref):
    """x_ref: (G, 8, W) lane-dense tile; shift_ref: (1, W);
    sum_ref / sq_ref: (8, W) per-core accumulators (resident across axis 1)."""
    t = pl.program_id(1)

    @pl.when(t == 0)
    def _init():
        sum_ref[...] = jnp.zeros_like(sum_ref)
        sq_ref[...] = jnp.zeros_like(sq_ref)

    x = x_ref[...]
    if x.dtype != jnp.float32:          # trace-time check: no dead cast for f32 input
        x = x.astype(jnp.float32)
    x = x - shift_ref[...]              # (G, 8, W) - (1, W): pure VPU

    # Reductions over the leading (non-layout) axis lower to plain vreg adds;
    # no per-step XLU / cross-sublane work.
    sum_ref[...] += jnp.sum(x, axis=0)
    sq_ref[...] += jnp.sum(x * x, axis=0)


def _moments_small(points):
    """Plain-JAX fallback for point clouds too small to tile."""
    pts = points.astype(jnp.float32)
    return jnp.mean(pts, axis=0), jnp.std(pts, axis=0, ddof=1)


@functools.partial(jax.jit, static_argnames=("target_block_bytes", "num_cores"))
def column_moments(points, *, target_block_bytes=2 * 1024 * 1024, num_cores=2):
    """Column-wise mean and unbiased std (ddof=1) over axis 0 of (N, C) points."""
    n, c = points.shape
    if n < 2:
        return _moments_small(points)

    # Shift (first point) keeps the one-pass moments well conditioned.
    shift = points[0].astype(jnp.float32)                       # (C,)

    # Lane-dense packing: L whole points per lane-row of width W = lcm(C, 128).
    lane_pts = 128 // math.gcd(c, 128)
    w = lane_pts * c                                            # multiple of 128
    row_bytes = w * 4

    m_total = n // lane_pts                                     # full lane-rows
    tile_cap = max(8, (target_block_bytes // row_bytes) // 8 * 8)

    cfg = None
    for cores in (num_cores, 1):
        tile_rows = min(tile_cap, (m_total // cores) // 8 * 8)
        if tile_rows >= 8:
            cfg = (cores, tile_rows, m_total // (cores * tile_rows))
            break
    if cfg is None:
        return _moments_small(points)                           # tiny cloud

    cores, tile_rows, tiles_per_core = cfg
    m_bulk = cores * tiles_per_core * tile_rows                 # lane-rows in kernel
    n_bulk = m_bulk * lane_pts                                  # points in kernel

    bulk = points if n_bulk == n else points[:n_bulk]
    x3d = bulk.reshape(m_bulk // 8, 8, w)                       # row-major => free view
    shift_lanes = jnp.tile(shift, lane_pts).reshape(1, w)       # per-lane shift

    g_block = tile_rows // 8                                    # leading blocks of 8 rows

    sums, sqs = pl.pallas_call(
        _moments_kernel,
        out_shape=(
            jax.ShapeDtypeStruct((cores, 8, w), jnp.float32),
            jax.ShapeDtypeStruct((cores, 8, w), jnp.float32),
        ),
        grid=(cores, tiles_per_core),
        in_specs=[
            pl.BlockSpec((g_block, 8, w),
                         lambda cc, t: (cc * tiles_per_core + t, 0, 0)),
            pl.BlockSpec((1, w), lambda cc, t: (0, 0)),
        ],
        out_specs=(
            pl.BlockSpec((None, 8, w), lambda cc, t: (cc, 0, 0)),
            pl.BlockSpec((None, 8, w), lambda cc, t: (cc, 0, 0)),
        ),
        compiler_params=pltpu.CompilerParams(
            dimension_semantics=("parallel", "arbitrary"),
            vmem_limit_bytes=32 * 1024 * 1024,
        ),
    )(x3d, shift_lanes)

    # Tiny finalize (8*W floats): fold cores+sublanes, then lanes -> columns.
    lane_sum = jnp.sum(sums, axis=(0, 1))                       # (W,)
    lane_sq = jnp.sum(sqs, axis=(0, 1))                         # (W,)
    col_sum = lane_sum.reshape(lane_pts, c).sum(axis=0)         # (C,)
    col_sq = lane_sq.reshape(lane_pts, c).sum(axis=0)           # (C,)

    if n_bulk < n:                                              # small tail in plain JAX
        rem = points[n_bulk:].astype(jnp.float32) - shift
        col_sum = col_sum + jnp.sum(rem, axis=0)
        col_sq = col_sq + jnp.sum(rem * rem, axis=0)

    n_f = jnp.float32(n)
    mean = shift + col_sum / n_f
    var = (col_sq - col_sum * col_sum / n_f) / (n_f - 1.0)      # unbiased, shift cancels
    std = jnp.sqrt(jnp.maximum(var, 0.0))
    return mean, std


def dummy_detector_forward(batch_dict):
    """JAX/Pallas equivalent of DummyDetector.forward."""
    points = batch_dict["points"]                               # (N, C), C >= 4
    mean_all, std_all = column_moments(points)
    center = mean_all[1:4]
    std = std_all[1:4]
    angle = jnp.array([0.0], dtype=jnp.float32)
    bbox = jnp.concatenate([center, std, angle]).reshape(1, -1)  # (1, 7)
    pred_dicts = [{
        "pred_boxes": bbox,
        "pred_scores": jnp.array([1.0], dtype=jnp.float32),
    }]
    return pred_dicts, 1.0


if __name__ == "__main__":
    key = jax.random.PRNGKey(0)
    k1, k2 = jax.random.split(key)

    # Test 1: pcdet-style points [batch_idx, x, y, z, intensity], ragged N (tail path).
    n1, c1 = 6403, 5
    pts1 = jax.random.normal(k1, (n1, c1), dtype=jnp.float32)
    pts1 = pts1.at[:, 0].set(0.0)
    pred_dicts, ratio = dummy_detector_forward({"points": pts1})
    bbox1 = jax.block_until_ready(pred_dicts[0]["pred_boxes"])
    scores1 = jax.block_until_ready(pred_dicts[0]["pred_scores"])
    ref1 = jnp.concatenate([
        jnp.mean(pts1[:, 1:4], axis=0),
        jnp.std(pts1[:, 1:4], axis=0, ddof=1),
        jnp.array([0.0], jnp.float32),
    ]).reshape(1, -1)
    assert bbox1.shape == (1, 7)
    assert scores1.shape == (1,)
    assert ratio == 1.0
    assert jnp.allclose(bbox1, ref1, atol=1e-4, rtol=1e-4), (bbox1, ref1)

    # Test 2: larger cloud with world-frame offsets (exercises the shifted
    # accumulation) and a small block target so each core loops over many tiles.
    n2, c2 = 50_000, 8
    pts2 = jax.random.normal(k2, (n2, c2), dtype=jnp.float32)
    pts2 = pts2.at[:, 0].set(0.0)
    pts2 = pts2.at[:, 1:4].add(jnp.array([100.0, -50.0, 20.0], jnp.float32))
    mean2, std2 = column_moments(pts2, target_block_bytes=64 * 1024)
    mean2 = jax.block_until_ready(mean2)
    std2 = jax.block_until_ready(std2)
    assert jnp.allclose(mean2[1:4], jnp.mean(pts2[:, 1:4], axis=0), atol=1e-3, rtol=1e-3)
    assert jnp.allclose(std2[1:4], jnp.std(pts2[:, 1:4], axis=0, ddof=1), atol=1e-3, rtol=1e-3)

    print("KERNEL_OK")
</pallas_src>

<mosaic_0001>
module attributes {stable_mosaic.version = 11 : i64} {
  func.func @_moments_kernel(%arg0: i32, %arg1: i32, %arg2: memref<3x8x640xf32, #tpu.memory_space<vmem>>, %arg3: memref<1x640xf32, #tpu.memory_space<vmem>>, %arg4: memref<1x8x640xf32, #tpu.memory_space<vmem>>, %arg5: memref<1x8x640xf32, #tpu.memory_space<vmem>>) attributes {dimension_semantics = [#tpu.dimension_semantics<parallel>, #tpu.dimension_semantics<arbitrary>], iteration_bounds = array<i64: 2, 1>, scalar_prefetch = 0 : i64, scratch_operands = 0 : i64, tpu.core_type = #tpu.core_type<tc>, window_params = [{transform_indices = @transform_0, window_bounds = array<i64: 3, 8, 640>}, {pipeline_mode = #tpu.pipeline_mode<synchronous>, transform_indices = @transform_1, window_bounds = array<i64: 1, 640>}, {transform_indices = @transform_2, window_bounds = array<i64: 1, 8, 640>}, {transform_indices = @transform_3, window_bounds = array<i64: 1, 8, 640>}]} {
    %c0_i32 = arith.constant 0 : i32
    %0 = arith.cmpi eq, %arg1, %c0_i32 : i32
    %1 = arith.extui %0 : i1 to i32
    %c0_i32_0 = arith.constant 0 : i32
    %2 = arith.cmpi ne, %1, %c0_i32_0 : i32
    scf.if %2 {
      %cst_18 = arith.constant 0.000000e+00 : f32
      %23 = vector.broadcast %cst_18 : f32 to vector<8x640xf32>
      %c0_19 = arith.constant 0 : index
      %c0_20 = arith.constant 0 : index
      %c0_21 = arith.constant 0 : index
      %24 = vector.load %arg4[%c0_19, %c0_20, %c0_21] : memref<1x8x640xf32, #tpu.memory_space<vmem>>, vector<1x8x640xf32>
      %25 = vector.shape_cast %24 : vector<1x8x640xf32> to vector<8x640xf32>
      %26 = vector.shape_cast %23 : vector<8x640xf32> to vector<1x8x640xf32>
      tpu.vector_store %arg4[%c0_19, %c0_20, %c0_21], %26 {strides = array<i32>} : memref<1x8x640xf32, #tpu.memory_space<vmem>>, vector<1x8x640xf32>,
      %cst_22 = arith.constant 0.000000e+00 : f32
      %27 = vector.broadcast %cst_22 : f32 to vector<8x640xf32>
      %c0_23 = arith.constant 0 : index
      %c0_24 = arith.constant 0 : index
      %c0_25 = arith.constant 0 : index
      %28 = vector.load %arg5[%c0_23, %c0_24, %c0_25] : memref<1x8x640xf32, #tpu.memory_space<vmem>>, vector<1x8x640xf32>
      %29 = vector.shape_cast %28 : vector<1x8x640xf32> to vector<8x640xf32>
      %30 = vector.shape_cast %27 : vector<8x640xf32> to vector<1x8x640xf32>
      tpu.vector_store %arg5[%c0_23, %c0_24, %c0_25], %30 {strides = array<i32>} : memref<1x8x640xf32, #tpu.memory_space<vmem>>, vector<1x8x640xf32>,
    } else {
    }
    %c0 = arith.constant 0 : index
    %c0_1 = arith.constant 0 : index
    %c0_2 = arith.constant 0 : index
    %3 = vector.load %arg2[%c0, %c0_1, %c0_2] : memref<3x8x640xf32, #tpu.memory_space<vmem>>, vector<3x8x640xf32>
    %c0_3 = arith.constant 0 : index
    %c0_4 = arith.constant 0 : index
    %4 = vector.load %arg3[%c0_3, %c0_4] : memref<1x640xf32, #tpu.memory_space<vmem>>, vector<1x640xf32>
    %5 = vector.shape_cast %4 : vector<1x640xf32> to vector<1x1x640xf32>
    %6 = vector.broadcast %5 : vector<1x1x640xf32> to vector<3x8x640xf32>
    %7 = arith.subf %3, %6 : vector<3x8x640xf32>
    %c0_5 = arith.constant 0 : index
    %c0_6 = arith.constant 0 : index
    %c0_7 = arith.constant 0 : index
    %8 = vector.load %arg4[%c0_5, %c0_6, %c0_7] : memref<1x8x640xf32, #tpu.memory_space<vmem>>, vector<1x8x640xf32>
    %9 = vector.shape_cast %8 : vector<1x8x640xf32> to vector<8x640xf32>
    %cst = arith.constant dense<0.000000e+00> : vector<8x640xf32>
    %10 = vector.multi_reduction <add>, %7, %cst [0] : vector<3x8x640xf32> to vector<8x640xf32>
    %11 = arith.addf %9, %10 : vector<8x640xf32>
    %c0_8 = arith.constant 0 : index
    %c0_9 = arith.constant 0 : index
    %c0_10 = arith.constant 0 : index
    %12 = vector.load %arg4[%c0_8, %c0_9, %c0_10] : memref<1x8x640xf32, #tpu.memory_space<vmem>>, vector<1x8x640xf32>
    %13 = vector.shape_cast %12 : vector<1x8x640xf32> to vector<8x640xf32>
    %14 = vector.shape_cast %11 : vector<8x640xf32> to vector<1x8x640xf32>
    tpu.vector_store %arg4[%c0_8, %c0_9, %c0_10], %14 {strides = array<i32>} : memref<1x8x640xf32, #tpu.memory_space<vmem>>, vector<1x8x640xf32>,
    %c0_11 = arith.constant 0 : index
    %c0_12 = arith.constant 0 : index
    %c0_13 = arith.constant 0 : index
    %15 = vector.load %arg5[%c0_11, %c0_12, %c0_13] : memref<1x8x640xf32, #tpu.memory_space<vmem>>, vector<1x8x640xf32>
    %16 = vector.shape_cast %15 : vector<1x8x640xf32> to vector<8x640xf32>
    %17 = arith.mulf %7, %7 : vector<3x8x640xf32>
    %cst_14 = arith.constant dense<0.000000e+00> : vector<8x640xf32>
    %18 = vector.multi_reduction <add>, %17, %cst_14 [0] : vector<3x8x640xf32> to vector<8x640xf32>
    %19 = arith.addf %16, %18 : vector<8x640xf32>
    %c0_15 = arith.constant 0 : index
    %c0_16 = arith.constant 0 : index
    %c0_17 = arith.constant 0 : index
    %20 = vector.load %arg5[%c0_15, %c0_16, %c0_17] : memref<1x8x640xf32, #tpu.memory_space<vmem>>, vector<1x8x640xf32>
    %21 = vector.shape_cast %20 : vector<1x8x640xf32> to vector<8x640xf32>
    %22 = vector.shape_cast %19 : vector<8x640xf32> to vector<1x8x640xf32>
    tpu.vector_store %arg5[%c0_15, %c0_16, %c0_17], %22 {strides = array<i32>} : memref<1x8x640xf32, #tpu.memory_space<vmem>>, vector<1x8x640xf32>,
    return
  }
  func.func @transform_0(%arg0: i32, %arg1: i32) -> (i32, i32, i32) {
    %c1_i32 = arith.constant 1 : i32
    %0 = arith.muli %arg0, %c1_i32 : i32
    %1 = arith.addi %0, %arg1 : i32
    %c0_i32 = arith.constant 0 : i32
    %c0_i32_0 = arith.constant 0 : i32
    %c0_i32_1 = arith.constant 0 : i32
    return %1, %c0_i32, %c0_i32_0 : i32, i32, i32
  }
  func.func @transform_1(%arg0: i32, %arg1: i32) -> (i32, i32) {
    %c0_i32 = arith.constant 0 : i32
    %c0_i32_0 = arith.constant 0 : i32
    %c0_i32_1 = arith.constant 0 : i32
    return %c0_i32, %c0_i32_0 : i32, i32
  }
  func.func @transform_2(%arg0: i32, %arg1: i32) -> (i32, i32, i32) {
    %c0_i32 = arith.constant 0 : i32
    %c0_i32_0 = arith.constant 0 : i32
    %c0_i32_1 = arith.constant 0 : i32
    return %arg0, %c0_i32, %c0_i32_0 : i32, i32, i32
  }
  func.func @transform_3(%arg0: i32, %arg1: i32) -> (i32, i32, i32) {
    %c0_i32 = arith.constant 0 : i32
    %c0_i32_0 = arith.constant 0 : i32
    %c0_i32_1 = arith.constant 0 : i32
    return %arg0, %c0_i32, %c0_i32_0 : i32, i32, i32
  }
}

</mosaic_0001>

<bundles_post_ra>
// kernel: tile.6
= control target key start
LH: loop header
LB: loop body
LE: loop exit
PB: predicated region body
PF: predicated region fallthrough
CT: control target
= control target key end

     0   :  { %s112_s0 = inlined_call_operand.vmem [shape: f32[5], index: 0, kind: input, shape index: {}]   ;;  %s113_s1 = inlined_call_operand.vmem [shape: f32[128,5], index: 1, kind: output, shape index: {}]  }
   0x1   :  { %v4_v0 = vld [vmem:[%s112_s0] ss:$0 sm:$0xff] }
   0x2   :  { %5 = vst [vmem:[%s113_s1] sm:$0xff] %v4_v0  ;;  %36 = vst [vmem:[%s113_s1 + $0x8] sm:$0xff] %v4_v0 }
   0x3   :  { %37 = vst [vmem:[%s113_s1 + $0x10] sm:$0xff] %v4_v0  ;;  %38 = vst [vmem:[%s113_s1 + $0x18] sm:$0xff] %v4_v0 }
   0x4   :  { %39 = vst [vmem:[%s113_s1 + $0x20] sm:$0xff] %v4_v0  ;;  %40 = vst [vmem:[%s113_s1 + $0x28] sm:$0xff] %v4_v0 }
   0x5   :  { %41 = vst [vmem:[%s113_s1 + $0x30] sm:$0xff] %v4_v0  ;;  %42 = vst [vmem:[%s113_s1 + $0x38] sm:$0xff] %v4_v0 }
   0x6   :  { %43 = vst [vmem:[%s113_s1 + $0x40] sm:$0xff] %v4_v0  ;;  %44 = vst [vmem:[%s113_s1 + $0x48] sm:$0xff] %v4_v0 }
   0x7   :  { %45 = vst [vmem:[%s113_s1 + $0x50] sm:$0xff] %v4_v0  ;;  %46 = vst [vmem:[%s113_s1 + $0x58] sm:$0xff] %v4_v0 }
   0x8   :  { %47 = vst [vmem:[%s113_s1 + $0x60] sm:$0xff] %v4_v0  ;;  %48 = vst [vmem:[%s113_s1 + $0x68] sm:$0xff] %v4_v0 }
   0x9   :  { %49 = vst [vmem:[%s113_s1 + $0x70] sm:$0xff] %v4_v0  ;;  %50 = vst [vmem:[%s113_s1 + $0x78] sm:$0xff] %v4_v0 }

// kernel: tile.7
= control target key start
LH: loop header
LB: loop body
LE: loop exit
PB: predicated region body
PF: predicated region fallthrough
CT: control target
= control target key end

     0   :  { %vm9_vm0 = vcmask 7168   ;;  %vm27_vm1 = vcmask 23552   ;;  %s1191_s14 = smov 127   ;;  %vm23_vm2 = vcmask 15360   ;;  %s1192_s19 = smov 125   ;;  %vm13_vm3 = vcmask 31744   ;;  %s1747_s0 = inlined_call_operand.vmem [shape: f32[128,5], index: 0, kind: input, shape index: {}]   ;;  %s1748_s1 = inlined_call_operand.vmem [shape: f32[1,640], index: 1, kind: output, shape index: {}]  }
   0x1   :  { %v929_v0 = vld [vmem:[%s1747_s0 + $0x33] sm:$0x1]   ;;  %v933_v3 = vld [vmem:[%s1747_s0 + $0x19] sm:$0x1]   ;;  %v931_v6 = vld [vmem:[%s1747_s0 + $0x66] sm:$0x1]  }
   0x2   :  { %v930_v1 = vld [vmem:[%s1747_s0 + $0x33] sm:$0x1]   ;;  %v934_v4 = vld [vmem:[%s1747_s0 + $0x19] sm:$0x1]   ;;  %v932_v7 = vld [vmem:[%s1747_s0 + $0x66] sm:$0x1]  }
   0x3   :  { %v10_v2 = vsel %vm9_vm0, %v930_v1, %v929_v0  ;;  %v38_v5 = vsel %vm27_vm1, %v934_v4, %v933_v3  ;;  %v24_v8 = vsel %vm23_vm2, %v932_v7, %v931_v6  ;;  %v935_v9 = vld [vmem:[%s1747_s0 + $0x4c] sm:$0x1]   ;;  %s1193_s24 = smov 126   ;;  %s1194_s25 = smov 124   ;;  %v937_v12 = vld [vmem:[%s1747_s0 + $0x7f] sm:$0x1]  }
   0x4   :  { %11 = vrot.lane.b32.xlu0 %v10_v2, %s1191_s14  ;;  %39 = vrot.lane.b32.xlu1 %v38_v5, %s1192_s19  ;;  %v936_v10 = vld [vmem:[%s1747_s0 + $0x4c] sm:$0x1]   ;;  %v938_v13 = vld [vmem:[%s1747_s0 + $0x32] sm:$0x1]   ;;  %s1195_s30 = smov 123   ;;  %s1196_s2 = smov 122  }
   0x5   :  { %v51_v11 = vsel %vm13_vm3, %v936_v10, %v935_v9  ;;  %v939_v14 = vld [vmem:[%s1747_s0 + $0x65] sm:$0x1]   ;;  %v940_v15 = vld [vmem:[%s1747_s0 + $0x18] sm:$0x1]   ;;  %s1197_s7 = smov 121   ;;  %s1198_s8 = smov 120  }
   0x6   :  { %v941_v16 = vld [vmem:[%s1747_s0 + $0x4b] sm:$0x1]   ;;  %v942_v17 = vld [vmem:[%s1747_s0 + $0x7e] sm:$0x1]   ;;  %s1199_s13 = smov 119   ;;  %s1200_s14 = smov 118  }
   0x7   :  { %v943_v18 = vld [vmem:[%s1747_s0 + $0x31] sm:$0x1]   ;;  %v944_v19 = vld [vmem:[%s1747_s0 + $0x64] sm:$0x1]   ;;  %s1201_s19 = smov 117   ;;  %s1202_s20 = smov 116  }
   0x8   :  { %25 = vrot.lane.b32.xlu0 %v24_v8, %s1193_s24  ;;  %52 = vrot.lane.b32.xlu1 %v51_v11, %s1194_s25  ;;  %v945_v20 = vld [vmem:[%s1747_s0 + $0x17] sm:$0x1]   ;;  %v946_v21 = vld [vmem:[%s1747_s0 + $0x4a] sm:$0x1]   ;;  %s1203_s25 = smov 115   ;;  %s1204_s26 = smov 114  }
   0x9   :  { %v947_v22 = vld [vmem:[%s1747_s0 + $0x7d] sm:$0x1]   ;;  %v948_v23 = vld [vmem:[%s1747_s0 + $0x30] sm:$0x1]   ;;  %s1206_s3 = smov 112   ;;  %vm3_vm4 = vcmask 39936  }
   0xa   :  { %v949_v24 = vld [vmem:[%s1747_s0 + $0x63] sm:$0x1]   ;;  %v950_v25 = vld [vmem:[%s1747_s0 + $0x16] sm:$0x1]   ;;  %v2_v26 = vld [vmem:[%s1747_s0] sm:$0x1]  }
   0xb   :  { %4 = vst.msk [vmem:[#allocation0] sm:$0x1] %vm3_vm4, %v2_v26   ;;  %s1207_s10 = smov 111   ;;  %s1208_s11 = smov 110   ;;  %v951_v27 = vld [vmem:[%s1747_s0 + $0x49] sm:$0x1]  }
   0xc   :  { %62 = vrot.lane.b32.xlu0 %v937_v12, %s1195_s30  ;;  %69 = vrot.lane.b32.xlu1 %v938_v13, %s1196_s2  ;;  %s1205_s2 = smov 113   ;;  %v952_v28 = vld [vmem:[%s1747_s0 + $0x7c] sm:$0x1]   ;;  %s1209_s16 = smov 109   ;;  %v953_v29 = vld [vmem:[%s1747_s0 + $0x2f] sm:$0x1]  }
   0xd   :  { %s1210_s17 = smov 108   ;;  %v954_v30 = vld [vmem:[%s1747_s0 + $0x62] sm:$0x1]   ;;  %s1211_s22 = smov 107   ;;  %v955_v31 = vld [vmem:[%s1747_s0 + $0x15] sm:$0x1]  }
   0xe   :  { %s1212_s23 = smov 106   ;;  %v956_v32 = vld [vmem:[%s1747_s0 + $0x48] sm:$0x1]   ;;  %s1213_s28 = smov 105   ;;  %v957_v33 = vld [vmem:[%s1747_s0 + $0x7b] sm:$0x1]  }
   0xf   :  { %s1214_s29 = smov 104   ;;  %v958_v34 = vld [vmem:[%s1747_s0 + $0x2e] sm:$0x1]   ;;  %s1215_s5 = smov 103   ;;  %v959_v35 = vld [vmem:[%s1747_s0 + $0x61] sm:$0x1]  }
  0x10   :  { %76 = vrot.lane.b32.xlu0 %v939_v14, %s1197_s7  ;;  %83 = vrot.lane.b32.xlu1 %v940_v15, %s1198_s8  ;;  %s1216_s6 = smov 102   ;;  %v960_v36 = vld [vmem:[%s1747_s0 + $0x14] sm:$0x1]   ;;  %s1218_s12 = smov 100   ;;  %v961_v37 = vld [vmem:[%s1747_s0 + $0x47] sm:$0x1]  }
  0x11   :  { %v962_v38 = vld [vmem:[%s1747_s0 + $0x7a] sm:$0x1]   ;;  %s1220_s18 = smov 98   ;;  %v963_v39 = vld [vmem:[%s1747_s0 + $0x2d] sm:$0x1]   ;;  %s1222_s24 = smov 96  }
  0x12   :  { %v964_v40 = vld [vmem:[%s1747_s0 + $0x60] sm:$0x1]   ;;  %v965_v41 = vld [vmem:[%s1747_s0 + $0x13] sm:$0x1]   ;;  %v966_v42 = vld [vmem:[%s1747_s0 + $0x46] sm:$0x1]  }
  0x13   :  { %s1224_s30 = smov 94   ;;  %v967_v43 = vld [vmem:[%s1747_s0 + $0x79] sm:$0x1]   ;;  %v968_v44 = vld [vmem:[%s1747_s0 + $0x2c] sm:$0x1]   ;;  %s1226_s7 = smov 92  }
  0x14   :  { %89 = vrot.lane.b32.xlu0 %v941_v16, %s1199_s13  ;;  %96 = vrot.lane.b32.xlu1 %v942_v17, %s1200_s14  ;;  %v969_v45 = vld [vmem:[%s1747_s0 + $0x5f] sm:$0x1]   ;;  %v970_v46 = vld [vmem:[%s1747_s0 + $0x12] sm:$0x1]   ;;  %s1228_s13 = smov 90   ;;  %s1236_s8 = smov 82  }
  0x15   :  { %v971_v47 = vld [vmem:[%s1747_s0 + $0x45] sm:$0x1]   ;;  %v972_v48 = vld [vmem:[%s1747_s0 + $0x78] sm:$0x1]   ;;  %v973_v49 = vld [vmem:[%s1747_s0 + $0x2b] sm:$0x1]  }
  0x16   :  { %v974_v50 = vld [vmem:[%s1747_s0 + $0x5e] sm:$0x1]   ;;  %v975_v51 = vld [vmem:[%s1747_s0 + $0x11] sm:$0x1]   ;;  %v976_v52 = vld [vmem:[%s1747_s0 + $0x44] sm:$0x1]  }
  0x17   :  { %v977_v53 = vld [vmem:[%s1747_s0 + $0x77] sm:$0x1]   ;;  %v978_v54 = vld [vmem:[%s1747_s0 + $0x2a] sm:$0x1]   ;;  %v979_v55 = vld [vmem:[%s1747_s0 + $0x5d] sm:$0x1]  }
  0x18   :  { %103 = vrot.lane.b32.xlu0 %v943_v18, %s1201_s19  ;;  %110 = vrot.lane.b32.xlu1 %v944_v19, %s1202_s20  ;;  %s1230_s19 = smov 88   ;;  %v980_v56 = vld [vmem:[%s1747_s0 + $0x10] sm:$0x1]   ;;  %s1238_s14 = smov 80   ;;  %v981_v57 = vld [vmem:[%s1747_s0 + $0x43] sm:$0x1]  }
  0x19   :  { %v982_v58 = vld [vmem:[%s1747_s0 + $0x76] sm:$0x1]   ;;  %s1240_s20 = smov 78   ;;  %v983_v59 = vld [vmem:[%s1747_s0 + $0x29] sm:$0x1]   ;;  %s1246_s9 = smov 72  }
  0x1a   :  { %v984_v60 = vld [vmem:[%s1747_s0 + $0x5c] sm:$0x1]   ;;  %v985_v61 = vld [vmem:[%s1747_s0 + $0xf] sm:$0x1]   ;;  %v986_v62 = vld [vmem:[%s1747_s0 + $0x42] sm:$0x1]  }
  0x1b   :  { %v987_v63 = vld [vmem:[%s1747_s0 + $0x75] sm:$0x1]   ;;  %v988_v0 = vld [vmem:[%s1747_s0 + $0x28] sm:$0x1]   ;;  %v989_v1 = vld [vmem:[%s1747_s0 + $0x5b] sm:$0x1]  }
  0x1c   :  { %117 = vrot.lane.b32.xlu0 %v945_v20, %s1203_s25  ;;  %123 = vrot.lane.b32.xlu1 %v946_v21, %s1204_s26  ;;  %s1232_s25 = smov 86   ;;  %s1242_s26 = smov 76   ;;  %v990_v2 = vld [vmem:[%s1747_s0 + $0xe] sm:$0x1]   ;;  %vm16_vm5 = vcmask 1048568   ;;  %vm44_vm6 = vcmask 1048552  }
  0x1d   :  { %s1248_s15 = smov 70   ;;  %v991_v3 = vld [vmem:[%s1747_s0 + $0x41] sm:$0x1]   ;;  %v992_v5 = vld [vmem:[%s1747_s0 + $0x74] sm:$0x1]   ;;  %vm30_vm7 = vcmask 1048560  }
  0x1e   :  { %s1250_s21 = smov 68   ;;  %v993_v7 = vld [vmem:[%s1747_s0 + $0x27] sm:$0x1]   ;;  %vm57_vm8 = vcmask 1048544   ;;  %v994_v9 = vld [vmem:[%s1747_s0 + $0x5a] sm:$0x1]  }
  0x1f   :  { %vm64_vm9 = vcmask 1048536   ;;  %s1252_s27 = smov 66   ;;  %v995_v11 = vld [vmem:[%s1747_s0 + $0xd] sm:$0x1]   ;;  %vm71_vm10 = vcmask 1040336   ;;  %vm78_vm11 = vcmask 1032136  }
  0x20   :  { %130 = vrot.lane.b32.xlu0 %v947_v22, %s1205_s2  ;;  %137 = vrot.lane.b32.xlu1 %v948_v23, %s1206_s3  ;;  %s1234_s2 = smov 84   ;;  %s1244_s3 = smov 74   ;;  %v996_v13 = vld [vmem:[%s1747_s0 + $0x40] sm:$0x1]   ;;  %v997_v15 = vld [vmem:[%s1747_s0 + $0x73] sm:$0x1]  }
  0x21   :  { %s1254_s4 = smov 64   ;;  %vm85_vm12 = vcmask 1023936   ;;  %v998_v17 = vld [vmem:[%s1747_s0 + $0x26] sm:$0x1]   ;;  %vm91_vm13 = vcmask 1015736   ;;  %vm98_vm14 = vcmask 1007536  }
  0x22   :  { %v999_v19 = vld [vmem:[%s1747_s0 + $0x59] sm:$0x1]   ;;  %v1000_v21 = vld [vmem:[%s1747_s0 + $0xc] sm:$0x1]   ;;  %vm105_vm15 = vcmask 999336   ;;  %vm139_vm4 = vcmask 958336  }
  0x23   :  { %v1001_v23 = vld [vmem:[%s1747_s0 + $0x3f] sm:$0x1]  }
  0x24   :  { %144 = vrot.lane.b32.xlu0 %v949_v24, %s1207_s10  ;;  %151 = vrot.lane.b32.xlu1 %v950_v25, %s1208_s11  ;;  %s1217_s11 = smov 101   ;;  %s1256_s10 = smov 62   ;;  %v1002_v25 = vld [vmem:[%s1747_s0 + $0x72] sm:$0x1]  }
  0x28   :  { %157 = vrot.lane.b32.xlu0 %v951_v27, %s1209_s16  ;;  %164 = vrot.lane.b32.xlu1 %v952_v28, %s1210_s17  ;;  %s1219_s17 = smov 99   ;;  %s1258_s16 = smov 60   ;;  %v1003_v27 = vld [vmem:[%s1747_s0 + $0x25] sm:$0x1]  }
  0x2c   :  { %171 = vrot.lane.b32.xlu0 %v953_v29, %s1211_s22  ;;  %178 = vrot.lane.b32.xlu1 %v954_v30, %s1212_s23  ;;  %s1221_s23 = smov 97   ;;  %s1260_s22 = smov 58   ;;  %v1004_v29 = vld [vmem:[%s1747_s0 + $0x58] sm:$0x1]  }
  0x30   :  { %185 = vrot.lane.b32.xlu0 %v955_v31, %s1213_s28  ;;  %191 = vrot.lane.b32.xlu1 %v956_v32, %s1214_s29  ;;  %s1223_s29 = smov 95   ;;  %s1262_s28 = smov 56   ;;  %v1005_v31 = vld [vmem:[%s1747_s0 + $0xb] sm:$0x1]  }
  0x34   :  { %198 = vrot.lane.b32.xlu0 %v957_v33, %s1215_s5  ;;  %205 = vrot.lane.b32.xlu1 %v958_v34, %s1216_s6  ;;  %s1225_s6 = smov 93   ;;  %v1006_v33 = vld [vmem:[%s1747_s0 + $0x3e] sm:$0x1]   ;;  %s1264_s5 = smov 54  }
  0x38   :  { %212 = vrot.lane.b32.xlu0 %v959_v35, %s1217_s11  ;;  %219 = vrot.lane.b32.xlu1 %v960_v36, %s1218_s12  ;;  %s1227_s12 = smov 91   ;;  %v1007_v35 = vld [vmem:[%s1747_s0 + $0x71] sm:$0x1]   ;;  %s1266_s11 = smov 52  }
  0x3c   :  { %225 = vrot.lane.b32.xlu0 %v961_v37, %s1219_s17  ;;  %232 = vrot.lane.b32.xlu1 %v962_v38, %s1220_s18  ;;  %s1229_s18 = smov 89   ;;  %v1008_v37 = vld [vmem:[%s1747_s0 + $0x24] sm:$0x1]   ;;  %s1268_s17 = smov 50  }
  0x40   :  { %239 = vrot.lane.b32.xlu0 %v963_v39, %s1221_s23  ;;  %246 = vrot.lane.b32.xlu1 %v964_v40, %s1222_s24  ;;  %s1231_s24 = smov 87   ;;  %v1009_v39 = vld [vmem:[%s1747_s0 + $0x57] sm:$0x1]   ;;  %s1270_s23 = smov 48  }
  0x44   :  { %253 = vrot.lane.b32.xlu0 %v965_v41, %s1223_s29  ;;  %259 = vrot.lane.b32.xlu1 %v966_v42, %s1224_s30  ;;  %s1233_s30 = smov 85   ;;  %v1010_v41 = vld [vmem:[%s1747_s0 + $0xa] sm:$0x1]   ;;  %s1272_s29 = smov 46  }
  0x48   :  { %266 = vrot.lane.b32.xlu0 %v967_v43, %s1225_s6  ;;  %273 = vrot.lane.b32.xlu1 %v968_v44, %s1226_s7  ;;  %s1235_s7 = smov 83   ;;  %v1011_v43 = vld [vmem:[%s1747_s0 + $0x3d] sm:$0x1]   ;;  %s1274_s6 = smov 44  }
  0x4c   :  { %280 = vrot.lane.b32.xlu0 %v969_v45, %s1227_s12  ;;  %287 = vrot.lane.b32.xlu1 %v970_v46, %s1228_s13  ;;  %s1237_s13 = smov 81   ;;  %v1012_v45 = vld [vmem:[%s1747_s0 + $0x70] sm:$0x1]   ;;  %s1276_s12 = smov 42  }
  0x50   :  { %293 = vrot.lane.b32.xlu0 %v971_v47, %s1229_s18  ;;  %300 = vrot.lane.b32.xlu1 %v972_v48, %s1230_s19  ;;  %s1239_s19 = smov 79   ;;  %v1013_v47 = vld [vmem:[%s1747_s0 + $0x23] sm:$0x1]   ;;  %s1278_s18 = smov 40  }
  0x54   :  { %307 = vrot.lane.b32.xlu0 %v973_v49, %s1231_s24  ;;  %314 = vrot.lane.b32.xlu1 %v974_v50, %s1232_s25  ;;  %s1241_s25 = smov 77   ;;  %v1014_v49 = vld [vmem:[%s1747_s0 + $0x56] sm:$0x1]   ;;  %s1280_s24 = smov 38  }
  0x58   :  { %321 = vrot.lane.b32.xlu0 %v975_v51, %s1233_s30  ;;  %327 = vrot.lane.b32.xlu1 %v976_v52, %s1234_s2  ;;  %s1243_s2 = smov 75   ;;  %v1015_v51 = vld [vmem:[%s1747_s0 + $0x9] sm:$0x1]   ;;  %s1282_s30 = smov 36  }
  0x5c   :  { %334 = vrot.lane.b32.xlu0 %v977_v53, %s1235_s7  ;;  %341 = vrot.lane.b32.xlu1 %v978_v54, %s1236_s8  ;;  %s1245_s8 = smov 73   ;;  %v1016_v53 = vld [vmem:[%s1747_s0 + $0x3c] sm:$0x1]   ;;  %s1284_s7 = smov 34  }
  0x60   :  { %348 = vrot.lane.b32.xlu0 %v979_v55, %s1237_s13  ;;  %355 = vrot.lane.b32.xlu1 %v980_v56, %s1238_s14  ;;  %s1247_s14 = smov 71   ;;  %v1017_v55 = vld [vmem:[%s1747_s0 + $0x6f] sm:$0x1]   ;;  %s1286_s13 = smov 32  }
  0x64   :  { %361 = vrot.lane.b32.xlu0 %v981_v57, %s1239_s19  ;;  %368 = vrot.lane.b32.xlu1 %v982_v58, %s1240_s20  ;;  %s1249_s20 = smov 69   ;;  %v1018_v57 = vld [vmem:[%s1747_s0 + $0x22] sm:$0x1]   ;;  %s1288_s19 = smov 30  }
  0x68   :  { %375 = vrot.lane.b32.xlu0 %v983_v59, %s1241_s25  ;;  %382 = vrot.lane.b32.xlu1 %v984_v60, %s1242_s26  ;;  %s1251_s26 = smov 67   ;;  %v1019_v59 = vld [vmem:[%s1747_s0 + $0x55] sm:$0x1]   ;;  %s1290_s25 = smov 28  }
  0x6c   :  { %389 = vrot.lane.b32.xlu0 %v985_v61, %s1243_s2  ;;  %395 = vrot.lane.b32.xlu1 %v986_v62, %s1244_s3  ;;  %s1253_s3 = smov 65   ;;  %v1020_v61 = vld [vmem:[%s1747_s0 + $0x8] sm:$0x1]   ;;  %s1292_s2 = smov 26  }
  0x70   :  { %402 = vrot.lane.b32.xlu0 %v987_v63, %s1245_s8  ;;  %409 = vrot.lane.b32.xlu1 %v988_v0, %s1246_s9  ;;  %s1255_s9 = smov 63   ;;  %v1021_v63 = vld [vmem:[%s1747_s0 + $0x3b] sm:$0x1]   ;;  %s1294_s8 = smov 24  }
  0x74   :  { %416 = vrot.lane.b32.xlu0 %v989_v1, %s1247_s14  ;;  %423 = vrot.lane.b32.xlu1 %v990_v2, %s1248_s15  ;;  %s1257_s15 = smov 61   ;;  %v1022_v1 = vld [vmem:[%s1747_s0 + $0x6e] sm:$0x1]   ;;  %s1296_s14 = smov 22  }
  0x76   :  { %v12_v4 = vpop.permute.xlu0 %11   ;;  %v40_v6 = vpop.permute.xlu1 %39  }
  0x77   :  { %15 = vst.msk [vmem:[#allocation0 + $0x10] sm:$0x1] %vm13_vm3, %v12_v4   ;;  %vm132_vm3 = vcmask 966536  }
  0x78   :  { %18 = vst.msk [vmem:[#allocation0 + $0x8] sm:$0x1] %vm16_vm5, %v12_v4   ;;  %429 = vrot.lane.b32.xlu0 %v991_v3, %s1249_s20  ;;  %436 = vrot.lane.b32.xlu1 %v992_v5, %s1250_s21  ;;  %s1259_s21 = smov 59   ;;  %vm146_vm5 = vcmask 950136   ;;  %v1023_v3 = vld [vmem:[%s1747_s0 + $0x21] sm:$0x1]  }
  0x79   :  { %43 = vst.msk [vmem:[#allocation0 + $0x8] sm:$0x1] %vm23_vm2, %v40_v6   ;;  %vm125_vm2 = vcmask 974736   ;;  %v1024_v5 = vld [vmem:[%s1747_s0 + $0x54] sm:$0x1]   ;;  %s1298_s20 = smov 20  }
  0x7a   :  { %45 = vst.msk [vmem:[#allocation0] sm:$0x1] %vm44_vm6, %v40_v6   ;;  %v26_v8 = vpop.permute.xlu0 %25   ;;  %v53_v10 = vpop.permute.xlu1 %52   ;;  %vm153_vm6 = vcmask 941936  }
  0x7b   :  { %29 = vst.msk [vmem:[#allocation0 + $0x20] sm:$0x1] %vm27_vm1, %v26_v8   ;;  %vm119_vm1 = vcmask 982936  }
  0x7c   :  { %32 = vst.msk [vmem:[#allocation0 + $0x18] sm:$0x1] %vm30_vm7, %v26_v8   ;;  %443 = vrot.lane.b32.xlu0 %v993_v7, %s1251_s26  ;;  %450 = vrot.lane.b32.xlu1 %v994_v9, %s1252_s27  ;;  %s1261_s27 = smov 57   ;;  %vm159_vm7 = vcmask 933736   ;;  %v1025_v7 = vld [vmem:[%s1747_s0 + $0x7] sm:$0x1]  }
  0x7d   :  { %56 = vst.msk [vmem:[#allocation0 + $0x18] sm:$0x1] %vm9_vm0, %v53_v10   ;;  %vm112_vm0 = vcmask 991136   ;;  %v1026_v9 = vld [vmem:[%s1747_s0 + $0x3a] sm:$0x1]   ;;  %s1300_s26 = smov 18  }
  0x7e   :  { %59 = vst.msk [vmem:[#allocation0 + $0x10] sm:$0x1] %vm57_vm8, %v53_v10   ;;  %v63_v12 = vpop.permute.xlu0 %62   ;;  %v70_v14 = vpop.permute.xlu1 %69   ;;  %vm166_vm8 = vcmask 925536  }
  0x7f   :  { %66 = vst.msk [vmem:[#allocation0 + $0x20] sm:$0x1] %vm64_vm9, %v63_v12   ;;  %vm173_vm9 = vcmask 917336  }
  0x80   :  { %457 = vrot.lane.b32.xlu0 %v995_v11, %s1253_s3  ;;  %73 = vst.msk [vmem:[#allocation0 + $0x8] sm:$0x1] %vm71_vm10, %v70_v14   ;;  %463 = vrot.lane.b32.xlu1 %v996_v13, %s1254_s4  ;;  %s1263_s4 = smov 55   ;;  %vm180_vm10 = vcmask 909136   ;;  %v1027_v11 = vld [vmem:[%s1747_s0 + $0x6d] sm:$0x1]  }
  0x81   :  { %v1028_v13 = vld [vmem:[%s1747_s0 + $0x20] sm:$0x1]   ;;  %s1302_s3 = smov 16  }
  0x82   :  { %v77_v16 = vpop.permute.xlu0 %76   ;;  %v84_v18 = vpop.permute.xlu1 %83  }
  0x83   :  { %80 = vst.msk [vmem:[#allocation0 + $0x18] sm:$0x1] %vm78_vm11, %v77_v16   ;;  %vm187_vm11 = vcmask 900936  }
  0x84   :  { %470 = vrot.lane.b32.xlu0 %v997_v15, %s1255_s9  ;;  %86 = vst.msk [vmem:[#allocation0] sm:$0x1] %vm85_vm12, %v84_v18   ;;  %477 = vrot.lane.b32.xlu1 %v998_v17, %s1256_s10  ;;  %s1265_s10 = smov 53   ;;  %vm193_vm12 = vcmask 892736   ;;  %v1029_v15 = vld [vmem:[%s1747_s0 + $0x53] sm:$0x1]  }
  0x85   :  { %v1030_v17 = vld [vmem:[%s1747_s0 + $0x6] sm:$0x1]   ;;  %s1304_s9 = smov 14  }
  0x86   :  { %v90_v20 = vpop.permute.xlu0 %89   ;;  %v97_v22 = vpop.permute.xlu1 %96  }
  0x87   :  { %93 = vst.msk [vmem:[#allocation0 + $0x10] sm:$0x1] %vm91_vm13, %v90_v20   ;;  %vm200_vm13 = vcmask 884536  }
  0x88   :  { %484 = vrot.lane.b32.xlu0 %v999_v19, %s1257_s15  ;;  %100 = vst.msk [vmem:[#allocation0 + $0x20] sm:$0x1] %vm98_vm14, %v97_v22   ;;  %491 = vrot.lane.b32.xlu1 %v1000_v21, %s1258_s16  ;;  %s1267_s16 = smov 51   ;;  %vm207_vm14 = vcmask 876336   ;;  %v1031_v19 = vld [vmem:[%s1747_s0 + $0x39] sm:$0x1]  }
  0x89   :  { %v1032_v21 = vld [vmem:[%s1747_s0 + $0x6c] sm:$0x1]   ;;  %s1306_s15 = smov 12  }
  0x8a   :  { %v104_v24 = vpop.permute.xlu0 %103   ;;  %v111_v26 = vpop.permute.xlu1 %110  }
  0x8b   :  { %107 = vst.msk [vmem:[#allocation0 + $0x8] sm:$0x1] %vm105_vm15, %v104_v24   ;;  %vm214_vm15 = vcmask 868136  }
  0x8c   :  { %497 = vrot.lane.b32.xlu0 %v1001_v23, %s1259_s21  ;;  %114 = vst.msk [vmem:[#allocation0 + $0x18] sm:$0x1] %vm112_vm0, %v111_v26   ;;  %504 = vrot.lane.b32.xlu1 %v1002_v25, %s1260_s22  ;;  %s1269_s22 = smov 49   ;;  %vm221_vm0 = vcmask 859936   ;;  %v1033_v23 = vld [vmem:[%s1747_s0 + $0x1f] sm:$0x1]  }
  0x8d   :  { %v1034_v25 = vld [vmem:[%s1747_s0 + $0x52] sm:$0x1]   ;;  %s1308_s21 = smov 10  }
  0x8e   :  { %v118_v28 = vpop.permute.xlu0 %117   ;;  %v124_v30 = vpop.permute.xlu1 %123  }
  0x8f   :  { %120 = vst.msk [vmem:[#allocation0] sm:$0x1] %vm119_vm1, %v118_v28   ;;  %vm227_vm1 = vcmask 851736  }
  0x90   :  { %511 = vrot.lane.b32.xlu0 %v1003_v27, %s1261_s27  ;;  %127 = vst.msk [vmem:[#allocation0 + $0x10] sm:$0x1] %vm125_vm2, %v124_v30   ;;  %518 = vrot.lane.b32.xlu1 %v1004_v29, %s1262_s28  ;;  %s1271_s28 = smov 47   ;;  %vm234_vm2 = vcmask 843536   ;;  %v1035_v27 = vld [vmem:[%s1747_s0 + $0x5] sm:$0x1]  }
  0x91   :  { %v1036_v29 = vld [vmem:[%s1747_s0 + $0x38] sm:$0x1]   ;;  %s1310_s27 = smov 8  }
  0x92   :  { %v131_v32 = vpop.permute.xlu0 %130   ;;  %v138_v34 = vpop.permute.xlu1 %137  }
  0x93   :  { %134 = vst.msk [vmem:[#allocation0 + $0x20] sm:$0x1] %vm132_vm3, %v131_v32   ;;  %vm241_vm3 = vcmask 835336  }
  0x94   :  { %525 = vrot.lane.b32.xlu0 %v1005_v31, %s1263_s4  ;;  %141 = vst.msk [vmem:[#allocation0 + $0x8] sm:$0x1] %vm139_vm4, %v138_v34   ;;  %531 = vrot.lane.b32.xlu1 %v1006_v33, %s1264_s5  ;;  %s1273_s5 = smov 45   ;;  %vm248_vm4 = vcmask 827136   ;;  %v1037_v31 = vld [vmem:[%s1747_s0 + $0x6b] sm:$0x1]  }
  0x95   :  { %v1038_v33 = vld [vmem:[%s1747_s0 + $0x1e] sm:$0x1]   ;;  %s1312_s4 = smov 6  }
  0x96   :  { %v145_v36 = vpop.permute.xlu0 %144   ;;  %v152_v38 = vpop.permute.xlu1 %151  }
  0x97   :  { %148 = vst.msk [vmem:[#allocation0 + $0x18] sm:$0x1] %vm146_vm5, %v145_v36   ;;  %vm255_vm5 = vcmask 818936  }
  0x98   :  { %538 = vrot.lane.b32.xlu0 %v1007_v35, %s1265_s10  ;;  %154 = vst.msk [vmem:[#allocation0] sm:$0x1] %vm153_vm6, %v152_v38   ;;  %545 = vrot.lane.b32.xlu1 %v1008_v37, %s1266_s11  ;;  %s1275_s11 = smov 43   ;;  %vm261_vm6 = vcmask 810736   ;;  %v1039_v35 = vld [vmem:[%s1747_s0 + $0x51] sm:$0x1]  }
  0x99   :  { %v1040_v37 = vld [vmem:[%s1747_s0 + $0x4] sm:$0x1]   ;;  %s1314_s10 = smov 4  }
  0x9a   :  { %v158_v40 = vpop.permute.xlu0 %157   ;;  %v165_v42 = vpop.permute.xlu1 %164  }
  0x9b   :  { %161 = vst.msk [vmem:[#allocation0 + $0x10] sm:$0x1] %vm159_vm7, %v158_v40   ;;  %vm268_vm7 = vcmask 802536  }
  0x9c   :  { %552 = vrot.lane.b32.xlu0 %v1009_v39, %s1267_s16  ;;  %168 = vst.msk [vmem:[#allocation0 + $0x20] sm:$0x1] %vm166_vm8, %v165_v42   ;;  %559 = vrot.lane.b32.xlu1 %v1010_v41, %s1268_s17  ;;  %s1277_s17 = smov 41   ;;  %vm275_vm8 = vcmask 794336   ;;  %v1041_v39 = vld [vmem:[%s1747_s0 + $0x37] sm:$0x1]  }
  0x9d   :  { %v1042_v41 = vld [vmem:[%s1747_s0 + $0x6a] sm:$0x1]   ;;  %s1316_s16 = smov 2  }
  0x9e   :  { %v172_v44 = vpop.permute.xlu0 %171   ;;  %v179_v46 = vpop.permute.xlu1 %178  }
  0x9f   :  { %175 = vst.msk [vmem:[#allocation0 + $0x8] sm:$0x1] %vm173_vm9, %v172_v44   ;;  %vm282_vm9 = vcmask 786136  }
  0xa0   :  { %565 = vrot.lane.b32.xlu0 %v1011_v43, %s1269_s22  ;;  %182 = vst.msk [vmem:[#allocation0 + $0x18] sm:$0x1] %vm180_vm10, %v179_v46   ;;  %572 = vrot.lane.b32.xlu1 %v1012_v45, %s1270_s23  ;;  %s1279_s23 = smov 39   ;;  %vm289_vm10 = vcmask 777936   ;;  %v1043_v43 = vld [vmem:[%s1747_s0 + $0x1d] sm:$0x1]  }
  0xa1   :  { %v1044_v45 = vld [vmem:[%s1747_s0 + $0x50] sm:$0x1]  }
  0xa2   :  { %v186_v48 = vpop.permute.xlu0 %185   ;;  %v192_v50 = vpop.permute.xlu1 %191  }
  0xa3   :  { %188 = vst.msk [vmem:[#allocation0] sm:$0x1] %vm187_vm11, %v186_v48   ;;  %vm295_vm11 = vcmask 769736  }
  0xa4   :  { %579 = vrot.lane.b32.xlu0 %v1013_v47, %s1271_s28  ;;  %195 = vst.msk [vmem:[#allocation0 + $0x10] sm:$0x1] %vm193_vm12, %v192_v50   ;;  %586 = vrot.lane.b32.xlu1 %v1014_v49, %s1272_s29  ;;  %s1281_s29 = smov 37   ;;  %vm302_vm12 = vcmask 761536   ;;  %v1045_v47 = vld [vmem:[%s1747_s0 + $0x3] sm:$0x1]  }
  0xa5   :  { %v1046_v49 = vld [vmem:[%s1747_s0 + $0x36] sm:$0x1]  }
  0xa6   :  { %v199_v52 = vpop.permute.xlu0 %198   ;;  %v206_v54 = vpop.permute.xlu1 %205  }
  0xa7   :  { %202 = vst.msk [vmem:[#allocation0 + $0x20] sm:$0x1] %vm200_vm13, %v199_v52   ;;  %vm309_vm13 = vcmask 753336  }
  0xa8   :  { %593 = vrot.lane.b32.xlu0 %v1015_v51, %s1273_s5  ;;  %209 = vst.msk [vmem:[#allocation0 + $0x8] sm:$0x1] %vm207_vm14, %v206_v54   ;;  %599 = vrot.lane.b32.xlu1 %v1016_v53, %s1274_s6  ;;  %s1283_s6 = smov 35   ;;  %vm316_vm14 = vcmask 745136   ;;  %v1047_v51 = vld [vmem:[%s1747_s0 + $0x69] sm:$0x1]  }
  0xa9   :  { %v1048_v53 = vld [vmem:[%s1747_s0 + $0x1c] sm:$0x1]  }
  0xaa   :  { %v213_v56 = vpop.permute.xlu0 %212   ;;  %v220_v58 = vpop.permute.xlu1 %219  }
  0xab   :  { %216 = vst.msk [vmem:[#allocation0 + $0x18] sm:$0x1] %vm214_vm15, %v213_v56   ;;  %vm323_vm15 = vcmask 736936  }
  0xac   :  { %606 = vrot.lane.b32.xlu0 %v1017_v55, %s1275_s11  ;;  %222 = vst.msk [vmem:[#allocation0] sm:$0x1] %vm221_vm0, %v220_v58   ;;  %613 = vrot.lane.b32.xlu1 %v1018_v57, %s1276_s12  ;;  %s1285_s12 = smov 33   ;;  %vm329_vm0 = vcmask 728736   ;;  %v1049_v55 = vld [vmem:[%s1747_s0 + $0x4f] sm:$0x1]  }
  0xad   :  { %v1050_v57 = vld [vmem:[%s1747_s0 + $0x2] sm:$0x1]  }
  0xae   :  { %v226_v60 = vpop.permute.xlu0 %225   ;;  %v233_v62 = vpop.permute.xlu1 %232  }
  0xaf   :  { %229 = vst.msk [vmem:[#allocation0 + $0x10] sm:$0x1] %vm227_vm1, %v226_v60   ;;  %vm336_vm1 = vcmask 720536  }
  0xb0   :  { %620 = vrot.lane.b32.xlu0 %v1019_v59, %s1277_s17  ;;  %236 = vst.msk [vmem:[#allocation0 + $0x20] sm:$0x1] %vm234_vm2, %v233_v62   ;;  %627 = vrot.lane.b32.xlu1 %v1020_v61, %s1278_s18  ;;  %s1287_s18 = smov 31   ;;  %vm343_vm2 = vcmask 712336   ;;  %v1051_v59 = vld [vmem:[%s1747_s0 + $0x35] sm:$0x1]  }
  0xb1   :  { %v1052_v61 = vld [vmem:[%s1747_s0 + $0x68] sm:$0x1]  }
  0xb2   :  { %v240_v0 = vpop.permute.xlu0 %239   ;;  %v247_v2 = vpop.permute.xlu1 %246  }
  0xb3   :  { %243 = vst.msk [vmem:[#allocation0 + $0x8] sm:$0x1] %vm241_vm3, %v240_v0   ;;  %vm350_vm3 = vcmask 704136  }
  0xb4   :  { %633 = vrot.lane.b32.xlu0 %v1021_v63, %s1279_s23  ;;  %250 = vst.msk [vmem:[#allocation0 + $0x18] sm:$0x1] %vm248_vm4, %v247_v2   ;;  %640 = vrot.lane.b32.xlu1 %v1022_v1, %s1280_s24  ;;  %s1289_s24 = smov 29   ;;  %vm357_vm4 = vcmask 695936   ;;  %v1053_v63 = vld [vmem:[%s1747_s0 + $0x1b] sm:$0x1]  }
  0xb5   :  { %v1054_v1 = vld [vmem:[%s1747_s0 + $0x4e] sm:$0x1]  }
  0xb6   :  { %v254_v4 = vpop.permute.xlu0 %253   ;;  %v260_v6 = vpop.permute.xlu1 %259  }
  0xb7   :  { %256 = vst.msk [vmem:[#allocation0] sm:$0x1] %vm255_vm5, %v254_v4   ;;  %vm363_vm5 = vcmask 687736  }
  0xb8   :  { %647 = vrot.lane.b32.xlu0 %v1023_v3, %s1281_s29  ;;  %263 = vst.msk [vmem:[#allocation0 + $0x10] sm:$0x1] %vm261_vm6, %v260_v6   ;;  %654 = vrot.lane.b32.xlu1 %v1024_v5, %s1282_s30  ;;  %s1291_s30 = smov 27   ;;  %vm370_vm6 = vcmask 679536   ;;  %v1055_v3 = vld [vmem:[%s1747_s0 + $0x1] sm:$0x1]  }
  0xb9   :  { %v1056_v5 = vld [vmem:[%s1747_s0 + $0x34] sm:$0x1]  }
  0xba   :  { %v267_v8 = vpop.permute.xlu0 %266   ;;  %v274_v10 = vpop.permute.xlu1 %273  }
  0xbb   :  { %270 = vst.msk [vmem:[#allocation0 + $0x20] sm:$0x1] %vm268_vm7, %v267_v8   ;;  %vm377_vm7 = vcmask 671336  }
  0xbc   :  { %661 = vrot.lane.b32.xlu0 %v1025_v7, %s1283_s6  ;;  %277 = vst.msk [vmem:[#allocation0 + $0x8] sm:$0x1] %vm275_vm8, %v274_v10   ;;  %667 = vrot.lane.b32.xlu1 %v1026_v9, %s1284_s7  ;;  %s1293_s7 = smov 25   ;;  %vm384_vm8 = vcmask 663136   ;;  %v1057_v7 = vld [vmem:[%s1747_s0 + $0x67] sm:$0x1]  }
  0xbd   :  { %v1058_v9 = vld [vmem:[%s1747_s0 + $0x1a] sm:$0x1]  }
  0xbe   :  { %v281_v12 = vpop.permute.xlu0 %280   ;;  %v288_v14 = vpop.permute.xlu1 %287  }
  0xbf   :  { %284 = vst.msk [vmem:[#allocation0 + $0x18] sm:$0x1] %vm282_vm9, %v281_v12   ;;  %vm391_vm9 = vcmask 654936  }
  0xc0   :  { %674 = vrot.lane.b32.xlu0 %v1027_v11, %s1285_s12  ;;  %290 = vst.msk [vmem:[#allocation0] sm:$0x1] %vm289_vm10, %v288_v14   ;;  %681 = vrot.lane.b32.xlu1 %v1028_v13, %s1286_s13  ;;  %s1295_s13 = smov 23   ;;  %vm397_vm10 = vcmask 646736   ;;  %v1059_v11 = vld [vmem:[%s1747_s0 + $0x4d] sm:$0x1]  }
  0xc1   :  { %s1317_s0 = smov 1  }
  0xc2   :  { %v294_v16 = vpop.permute.xlu0 %293   ;;  %v301_v18 = vpop.permute.xlu1 %300  }
  0xc3   :  { %297 = vst.msk [vmem:[#allocation0 + $0x10] sm:$0x1] %vm295_vm11, %v294_v16   ;;  %vm404_vm11 = vcmask 638536  }
  0xc4   :  { %688 = vrot.lane.b32.xlu0 %v1029_v15, %s1287_s18  ;;  %304 = vst.msk [vmem:[#allocation0 + $0x20] sm:$0x1] %vm302_vm12, %v301_v18   ;;  %695 = vrot.lane.b32.xlu1 %v1030_v17, %s1288_s19  ;;  %s1297_s19 = smov 21   ;;  %vm411_vm12 = vcmask 630336  }
  0xc6   :  { %v308_v20 = vpop.permute.xlu0 %307   ;;  %v315_v22 = vpop.permute.xlu1 %314  }
  0xc7   :  { %311 = vst.msk [vmem:[#allocation0 + $0x8] sm:$0x1] %vm309_vm13, %v308_v20   ;;  %vm418_vm13 = vcmask 622136  }
  0xc8   :  { %701 = vrot.lane.b32.xlu0 %v1031_v19, %s1289_s24  ;;  %318 = vst.msk [vmem:[#allocation0 + $0x18] sm:$0x1] %vm316_vm14, %v315_v22   ;;  %708 = vrot.lane.b32.xlu1 %v1032_v21, %s1290_s25  ;;  %s1299_s25 = smov 19   ;;  %vm425_vm14 = vcmask 613936  }
  0xca   :  { %v322_v24 = vpop.permute.xlu0 %321   ;;  %v328_v26 = vpop.permute.xlu1 %327  }
  0xcb   :  { %324 = vst.msk [vmem:[#allocation0] sm:$0x1] %vm323_vm15, %v322_v24   ;;  %vm431_vm15 = vcmask 605736  }
  0xcc   :  { %715 = vrot.lane.b32.xlu0 %v1033_v23, %s1291_s30  ;;  %331 = vst.msk [vmem:[#allocation0 + $0x10] sm:$0x1] %vm329_vm0, %v328_v26   ;;  %722 = vrot.lane.b32.xlu1 %v1034_v25, %s1292_s2  ;;  %s1301_s2 = smov 17   ;;  %vm438_vm0 = vcmask 597536  }
  0xce   :  { %v335_v28 = vpop.permute.xlu0 %334   ;;  %v342_v30 = vpop.permute.xlu1 %341  }
  0xcf   :  { %338 = vst.msk [vmem:[#allocation0 + $0x20] sm:$0x1] %vm336_vm1, %v335_v28   ;;  %vm445_vm1 = vcmask 589336  }
  0xd0   :  { %729 = vrot.lane.b32.xlu0 %v1035_v27, %s1293_s7  ;;  %345 = vst.msk [vmem:[#allocation0 + $0x8] sm:$0x1] %vm343_vm2, %v342_v30   ;;  %735 = vrot.lane.b32.xlu1 %v1036_v29, %s1294_s8  ;;  %s1303_s8 = smov 15   ;;  %vm452_vm2 = vcmask 581136  }
  0xd2   :  { %v349_v32 = vpop.permute.xlu0 %348   ;;  %v356_v34 = vpop.permute.xlu1 %355  }
  0xd3   :  { %352 = vst.msk [vmem:[#allocation0 + $0x18] sm:$0x1] %vm350_vm3, %v349_v32   ;;  %vm459_vm3 = vcmask 572936  }
  0xd4   :  { %742 = vrot.lane.b32.xlu0 %v1037_v31, %s1295_s13  ;;  %358 = vst.msk [vmem:[#allocation0] sm:$0x1] %vm357_vm4, %v356_v34   ;;  %749 = vrot.lane.b32.xlu1 %v1038_v33, %s1296_s14  ;;  %s1305_s14 = smov 13   ;;  %vm465_vm4 = vcmask 564736  }
  0xd6   :  { %v362_v36 = vpop.permute.xlu0 %361   ;;  %v369_v38 = vpop.permute.xlu1 %368  }
  0xd7   :  { %365 = vst.msk [vmem:[#allocation0 + $0x10] sm:$0x1] %vm363_vm5, %v362_v36   ;;  %vm472_vm5 = vcmask 556536  }
  0xd8   :  { %756 = vrot.lane.b32.xlu0 %v1039_v35, %s1297_s19  ;;  %372 = vst.msk [vmem:[#allocation0 + $0x20] sm:$0x1] %vm370_vm6, %v369_v38   ;;  %763 = vrot.lane.b32.xlu1 %v1040_v37, %s1298_s20  ;;  %s1307_s20 = smov 11   ;;  %vm479_vm6 = vcmask 548336  }
  0xda   :  { %v376_v40 = vpop.permute.xlu0 %375   ;;  %v383_v42 = vpop.permute.xlu1 %382  }
  0xdb   :  { %379 = vst.msk [vmem:[#allocation0 + $0x8] sm:$0x1] %vm377_vm7, %v376_v40   ;;  %vm486_vm7 = vcmask 540136  }
  0xdc   :  { %769 = vrot.lane.b32.xlu0 %v1041_v39, %s1299_s25  ;;  %386 = vst.msk [vmem:[#allocation0 + $0x18] sm:$0x1] %vm384_vm8, %v383_v42   ;;  %776 = vrot.lane.b32.xlu1 %v1042_v41, %s1300_s26  ;;  %s1309_s26 = smov 9   ;;  %vm493_vm8 = vcmask 531936  }
  0xde   :  { %v390_v44 = vpop.permute.xlu0 %389   ;;  %v396_v46 = vpop.permute.xlu1 %395  }
  0xdf   :  { %392 = vst.msk [vmem:[#allocation0] sm:$0x1] %vm391_vm9, %v390_v44   ;;  %vm499_vm9 = vcmask 523736  }
  0xe0   :  { %783 = vrot.lane.b32.xlu0 %v1043_v43, %s1301_s2  ;;  %399 = vst.msk [vmem:[#allocation0 + $0x10] sm:$0x1] %vm397_vm10, %v396_v46   ;;  %790 = vrot.lane.b32.xlu1 %v1044_v45, %s1302_s3  ;;  %s1311_s3 = smov 7   ;;  %vm506_vm10 = vcmask 515536  }
  0xe2   :  { %v403_v48 = vpop.permute.xlu0 %402   ;;  %v410_v50 = vpop.permute.xlu1 %409  }
  0xe3   :  { %406 = vst.msk [vmem:[#allocation0 + $0x20] sm:$0x1] %vm404_vm11, %v403_v48   ;;  %vm513_vm11 = vcmask 507336  }
  0xe4   :  { %797 = vrot.lane.b32.xlu0 %v1045_v47, %s1303_s8  ;;  %413 = vst.msk [vmem:[#allocation0 + $0x8] sm:$0x1] %vm411_vm12, %v410_v50   ;;  %803 = vrot.lane.b32.xlu1 %v1046_v49, %s1304_s9  ;;  %s1313_s9 = smov 5   ;;  %vm520_vm12 = vcmask 499136  }
  0xe6   :  { %v417_v52 = vpop.permute.xlu0 %416   ;;  %v424_v54 = vpop.permute.xlu1 %423  }
  0xe7   :  { %420 = vst.msk [vmem:[#allocation0 + $0x18] sm:$0x1] %vm418_vm13, %v417_v52   ;;  %vm527_vm13 = vcmask 490936  }
  0xe8   :  { %810 = vrot.lane.b32.xlu0 %v1047_v51, %s1305_s14  ;;  %426 = vst.msk [vmem:[#allocation0] sm:$0x1] %vm425_vm14, %v424_v54   ;;  %817 = vrot.lane.b32.xlu1 %v1048_v53, %s1306_s15  ;;  %s1315_s15 = smov 3   ;;  %vm533_vm14 = vcmask 482736  }
  0xea   :  { %v430_v56 = vpop.permute.xlu0 %429   ;;  %v437_v58 = vpop.permute.xlu1 %436  }
  0xeb   :  { %433 = vst.msk [vmem:[#allocation0 + $0x10] sm:$0x1] %vm431_vm15, %v430_v56   ;;  %vm540_vm15 = vcmask 474536  }
  0xec   :  { %824 = vrot.lane.b32.xlu0 %v1049_v55, %s1307_s20  ;;  %440 = vst.msk [vmem:[#allocation0 + $0x20] sm:$0x1] %vm438_vm0, %v437_v58   ;;  %831 = vrot.lane.b32.xlu1 %v1050_v57, %s1308_s21  ;;  %vm547_vm0 = vcmask 466336  }
  0xee   :  { %v444_v60 = vpop.permute.xlu0 %443   ;;  %v451_v62 = vpop.permute.xlu1 %450  }
  0xef   :  { %447 = vst.msk [vmem:[#allocation0 + $0x8] sm:$0x1] %vm445_vm1, %v444_v60   ;;  %vm554_vm1 = vcmask 458136  }
  0xf0   :  { %837 = vrot.lane.b32.xlu0 %v1051_v59, %s1309_s26  ;;  %454 = vst.msk [vmem:[#allocation0 + $0x18] sm:$0x1] %vm452_vm2, %v451_v62   ;;  %844 = vrot.lane.b32.xlu1 %v1052_v61, %s1310_s27  ;;  %vm561_vm2 = vcmask 449936  }
  0xf2   :  { %v458_v0 = vpop.permute.xlu0 %457   ;;  %v464_v2 = vpop.permute.xlu1 %463  }
  0xf3   :  { %460 = vst.msk [vmem:[#allocation0] sm:$0x1] %vm459_vm3, %v458_v0   ;;  %vm567_vm3 = vcmask 441736  }
  0xf4   :  { %851 = vrot.lane.b32.xlu0 %v1053_v63, %s1311_s3  ;;  %467 = vst.msk [vmem:[#allocation0 + $0x10] sm:$0x1] %vm465_vm4, %v464_v2   ;;  %858 = vrot.lane.b32.xlu1 %v1054_v1, %s1312_s4  ;;  %vm574_vm4 = vcmask 433536  }
  0xf6   :  { %v471_v4 = vpop.permute.xlu0 %470   ;;  %v478_v6 = vpop.permute.xlu1 %477  }
  0xf7   :  { %474 = vst.msk [vmem:[#allocation0 + $0x20] sm:$0x1] %vm472_vm5, %v471_v4   ;;  %vm581_vm5 = vcmask 425336  }
  0xf8   :  { %865 = vrot.lane.b32.xlu0 %v1055_v3, %s1313_s9  ;;  %481 = vst.msk [vmem:[#allocation0 + $0x8] sm:$0x1] %vm479_vm6, %v478_v6   ;;  %871 = vrot.lane.b32.xlu1 %v1056_v5, %s1314_s10  ;;  %vm588_vm6 = vcmask 417136  }
  0xfa   :  { %v485_v8 = vpop.permute.xlu0 %484   ;;  %v492_v10 = vpop.permute.xlu1 %491  }
  0xfb   :  { %488 = vst.msk [vmem:[#allocation0 + $0x18] sm:$0x1] %vm486_vm7, %v485_v8   ;;  %vm595_vm7 = vcmask 408936  }
  0xfc   :  { %878 = vrot.lane.b32.xlu0 %v1057_v7, %s1315_s15  ;;  %494 = vst.msk [vmem:[#allocation0] sm:$0x1] %vm493_vm8, %v492_v10   ;;  %885 = vrot.lane.b32.xlu1 %v1058_v9, %s1316_s16  ;;  %vm601_vm8 = vcmask 400736  }
  0xfe   :  { %v498_v12 = vpop.permute.xlu0 %497   ;;  %v505_v13 = vpop.permute.xlu1 %504  }
  0xff   :  { %501 = vst.msk [vmem:[#allocation0 + $0x10] sm:$0x1] %vm499_vm9, %v498_v12   ;;  %vm608_vm9 = vcmask 392536  }
 0x100   :  { %892 = vrot.lane.b32.xlu0 %v1059_v11, %s1317_s0  ;;  %508 = vst.msk [vmem:[#allocation0 + $0x20] sm:$0x1] %vm506_vm10, %v505_v13   ;;  %vm615_vm10 = vcmask 384336  }
 0x102   :  { %v512_v14 = vpop.permute.xlu0 %511   ;;  %v519_v15 = vpop.permute.xlu1 %518  }
 0x103   :  { %515 = vst.msk [vmem:[#allocation0 + $0x8] sm:$0x1] %vm513_vm11, %v512_v14   ;;  %vm622_vm11 = vcmask 376136  }
 0x104   :  { %522 = vst.msk [vmem:[#allocation0 + $0x18] sm:$0x1] %vm520_vm12, %v519_v15   ;;  %vm629_vm12 = vcmask 367936  }
 0x106   :  { %v526_v16 = vpop.permute.xlu0 %525   ;;  %v532_v17 = vpop.permute.xlu1 %531  }
 0x107   :  { %528 = vst.msk [vmem:[#allocation0] sm:$0x1] %vm527_vm13, %v526_v16   ;;  %vm635_vm13 = vcmask 359736  }
 0x108   :  { %535 = vst.msk [vmem:[#allocation0 + $0x10] sm:$0x1] %vm533_vm14, %v532_v17   ;;  %vm642_vm14 = vcmask 351536  }
 0x10a   :  { %v539_v18 = vpop.permute.xlu0 %538   ;;  %v546_v19 = vpop.permute.xlu1 %545  }
 0x10b   :  { %542 = vst.msk [vmem:[#allocation0 + $0x20] sm:$0x1] %vm540_vm15, %v539_v18   ;;  %vm649_vm15 = vcmask 343336  }
 0x10c   :  { %549 = vst.msk [vmem:[#allocation0 + $0x8] sm:$0x1] %vm547_vm0, %v546_v19   ;;  %vm656_vm0 = vcmask 335136  }
 0x10e   :  { %v553_v20 = vpop.permute.xlu0 %552   ;;  %v560_v21 = vpop.permute.xlu1 %559  }
 0x10f   :  { %556 = vst.msk [vmem:[#allocation0 + $0x18] sm:$0x1] %vm554_vm1, %v553_v20   ;;  %vm663_vm1 = vcmask 326936  }
 0x110   :  { %562 = vst.msk [vmem:[#allocation0] sm:$0x1] %vm561_vm2, %v560_v21   ;;  %vm669_vm2 = vcmask 318736  }
 0x112   :  { %v566_v22 = vpop.permute.xlu0 %565   ;;  %v573_v23 = vpop.permute.xlu1 %572  }
 0x113   :  { %569 = vst.msk [vmem:[#allocation0 + $0x10] sm:$0x1] %vm567_vm3, %v566_v22   ;;  %vm676_vm3 = vcmask 310536  }
 0x114   :  { %576 = vst.msk [vmem:[#allocation0 + $0x20] sm:$0x1] %vm574_vm4, %v573_v23   ;;  %vm683_vm4 = vcmask 302336  }
 0x116   :  { %v580_v24 = vpop.permute.xlu0 %579   ;;  %v587_v25 = vpop.permute.xlu1 %586  }
 0x117   :  { %583 = vst.msk [vmem:[#allocation0 + $0x8] sm:$0x1] %vm581_vm5, %v580_v24   ;;  %vm690_vm5 = vcmask 294136  }
 0x118   :  { %590 = vst.msk [vmem:[#allocation0 + $0x18] sm:$0x1] %vm588_vm6, %v587_v25   ;;  %vm697_vm6 = vcmask 285936  }
 0x11a   :  { %v594_v26 = vpop.permute.xlu0 %593   ;;  %v600_v27 = vpop.permute.xlu1 %599  }
 0x11b   :  { %596 = vst.msk [vmem:[#allocation0] sm:$0x1] %vm595_vm7, %v594_v26   ;;  %vm703_vm7 = vcmask 277736  }
 0x11c   :  { %603 = vst.msk [vmem:[#allocation0 + $0x10] sm:$0x1] %vm601_vm8, %v600_v27   ;;  %vm710_vm8 = vcmask 269536  }
 0x11e   :  { %v607_v28 = vpop.permute.xlu0 %606   ;;  %v614_v29 = vpop.permute.xlu1 %613  }
 0x11f   :  { %610 = vst.msk [vmem:[#allocation0 + $0x20] sm:$0x1] %vm608_vm9, %v607_v28   ;;  %vm717_vm9 = vcmask 261336  }
 0x120   :  { %617 = vst.msk [vmem:[#allocation0 + $0x8] sm:$0x1] %vm615_vm10, %v614_v29   ;;  %vm724_vm10 = vcmask 253136  }
 0x122   :  { %v621_v30 = vpop.permute.xlu0 %620   ;;  %v628_v31 = vpop.permute.xlu1 %627  }
 0x123   :  { %624 = vst.msk [vmem:[#allocation0 + $0x18] sm:$0x1] %vm622_vm11, %v621_v30   ;;  %vm731_vm11 = vcmask 244936  }
 0x124   :  { %630 = vst.msk [vmem:[#allocation0] sm:$0x1] %vm629_vm12, %v628_v31   ;;  %vm737_vm12 = vcmask 236736  }
 0x126   :  { %v634_v32 = vpop.permute.xlu0 %633   ;;  %v641_v33 = vpop.permute.xlu1 %640  }
 0x127   :  { %637 = vst.msk [vmem:[#allocation0 + $0x10] sm:$0x1] %vm635_vm13, %v634_v32   ;;  %vm744_vm13 = vcmask 228536  }
 0x128   :  { %644 = vst.msk [vmem:[#allocation0 + $0x20] sm:$0x1] %vm642_vm14, %v641_v33   ;;  %vm751_vm14 = vcmask 220336  }
 0x12a   :  { %v648_v34 = vpop.permute.xlu0 %647   ;;  %v655_v35 = vpop.permute.xlu1 %654  }
 0x12b   :  { %651 = vst.msk [vmem:[#allocation0 + $0x8] sm:$0x1] %vm649_vm15, %v648_v34   ;;  %vm758_vm15 = vcmask 212136  }
 0x12c   :  { %658 = vst.msk [vmem:[#allocation0 + $0x18] sm:$0x1] %vm656_vm0, %v655_v35   ;;  %vm765_vm0 = vcmask 203936  }
 0x12e   :  { %v662_v36 = vpop.permute.xlu0 %661   ;;  %v668_v37 = vpop.permute.xlu1 %667  }
 0x12f   :  { %664 = vst.msk [vmem:[#allocation0] sm:$0x1] %vm663_vm1, %v662_v36   ;;  %vm771_vm1 = vcmask 195736  }
 0x130   :  { %671 = vst.msk [vmem:[#allocation0 + $0x10] sm:$0x1] %vm669_vm2, %v668_v37   ;;  %vm778_vm2 = vcmask 187536  }
 0x132   :  { %v675_v38 = vpop.permute.xlu0 %674   ;;  %v682_v39 = vpop.permute.xlu1 %681  }
 0x133   :  { %678 = vst.msk [vmem:[#allocation0 + $0x20] sm:$0x1] %vm676_vm3, %v675_v38   ;;  %vm785_vm3 = vcmask 179336  }
 0x134   :  { %685 = vst.msk [vmem:[#allocation0 + $0x8] sm:$0x1] %vm683_vm4, %v682_v39   ;;  %vm792_vm4 = vcmask 171136  }
 0x136   :  { %v689_v40 = vpop.permute.xlu0 %688   ;;  %v696_v41 = vpop.permute.xlu1 %695  }
 0x137   :  { %692 = vst.msk [vmem:[#allocation0 + $0x18] sm:$0x1] %vm690_vm5, %v689_v40   ;;  %vm799_vm5 = vcmask 162936  }
 0x138   :  { %698 = vst.msk [vmem:[#allocation0] sm:$0x1] %vm697_vm6, %v696_v41   ;;  %vm805_vm6 = vcmask 154736  }
 0x13a   :  { %v702_v42 = vpop.permute.xlu0 %701   ;;  %v709_v43 = vpop.permute.xlu1 %708  }
 0x13b   :  { %705 = vst.msk [vmem:[#allocation0 + $0x10] sm:$0x1] %vm703_vm7, %v702_v42   ;;  %vm812_vm7 = vcmask 146536  }
 0x13c   :  { %712 = vst.msk [vmem:[#allocation0 + $0x20] sm:$0x1] %vm710_vm8, %v709_v43   ;;  %vm819_vm8 = vcmask 138336  }
 0x13e   :  { %v716_v44 = vpop.permute.xlu0 %715   ;;  %v723_v45 = vpop.permute.xlu1 %722  }
 0x13f   :  { %719 = vst.msk [vmem:[#allocation0 + $0x8] sm:$0x1] %vm717_vm9, %v716_v44   ;;  %vm826_vm9 = vcmask 130136  }
 0x140   :  { %726 = vst.msk [vmem:[#allocation0 + $0x18] sm:$0x1] %vm724_vm10, %v723_v45   ;;  %vm833_vm10 = vcmask 121936  }
 0x142   :  { %v730_v46 = vpop.permute.xlu0 %729   ;;  %v736_v47 = vpop.permute.xlu1 %735  }
 0x143   :  { %732 = vst.msk [vmem:[#allocation0] sm:$0x1] %vm731_vm11, %v730_v46   ;;  %vm839_vm11 = vcmask 113736  }
 0x144   :  { %739 = vst.msk [vmem:[#allocation0 + $0x10] sm:$0x1] %vm737_vm12, %v736_v47   ;;  %vm846_vm12 = vcmask 105536  }
 0x146   :  { %v743_v48 = vpop.permute.xlu0 %742   ;;  %v750_v49 = vpop.permute.xlu1 %749  }
 0x147   :  { %746 = vst.msk [vmem:[#allocation0 + $0x20] sm:$0x1] %vm744_vm13, %v743_v48   ;;  %vm853_vm13 = vcmask 97336  }
 0x148   :  { %753 = vst.msk [vmem:[#allocation0 + $0x8] sm:$0x1] %vm751_vm14, %v750_v49   ;;  %vm860_vm14 = vcmask 89136  }
 0x14a   :  { %v757_v50 = vpop.permute.xlu0 %756   ;;  %v764_v51 = vpop.permute.xlu1 %763  }
 0x14b   :  { %760 = vst.msk [vmem:[#allocation0 + $0x18] sm:$0x1] %vm758_vm15, %v757_v50   ;;  %vm867_vm15 = vcmask 80936  }
 0x14c   :  { %766 = vst.msk [vmem:[#allocation0] sm:$0x1] %vm765_vm0, %v764_v51   ;;  %vm873_vm0 = vcmask 72736  }
 0x14e   :  { %v770_v52 = vpop.permute.xlu0 %769   ;;  %v777_v53 = vpop.permute.xlu1 %776  }
 0x14f   :  { %773 = vst.msk [vmem:[#allocation0 + $0x10] sm:$0x1] %vm771_vm1, %v770_v52   ;;  %vm880_vm1 = vcmask 64536  }
 0x150   :  { %780 = vst.msk [vmem:[#allocation0 + $0x20] sm:$0x1] %vm778_vm2, %v777_v53   ;;  %vm887_vm2 = vcmask 56336  }
 0x152   :  { %v784_v54 = vpop.permute.xlu0 %783   ;;  %v791_v55 = vpop.permute.xlu1 %790  }
 0x153   :  { %787 = vst.msk [vmem:[#allocation0 + $0x8] sm:$0x1] %vm785_vm3, %v784_v54   ;;  %vm894_vm3 = vcmask 48136  }
 0x154   :  { %794 = vst.msk [vmem:[#allocation0 + $0x18] sm:$0x1] %vm792_vm4, %v791_v55  }
 0x156   :  { %v798_v56 = vpop.permute.xlu0 %797   ;;  %v804_v57 = vpop.permute.xlu1 %803  }
 0x157   :  { %800 = vst.msk [vmem:[#allocation0] sm:$0x1] %vm799_vm5, %v798_v56  }
 0x158   :  { %807 = vst.msk [vmem:[#allocation0 + $0x10] sm:$0x1] %vm805_vm6, %v804_v57  }
 0x15a   :  { %v811_v58 = vpop.permute.xlu0 %810   ;;  %v818_v59 = vpop.permute.xlu1 %817  }
 0x15b   :  { %814 = vst.msk [vmem:[#allocation0 + $0x20] sm:$0x1] %vm812_vm7, %v811_v58  }
 0x15c   :  { %821 = vst.msk [vmem:[#allocation0 + $0x8] sm:$0x1] %vm819_vm8, %v818_v59  }
 0x15e   :  { %v825_v60 = vpop.permute.xlu0 %824   ;;  %v832_v61 = vpop.permute.xlu1 %831  }
 0x15f   :  { %828 = vst.msk [vmem:[#allocation0 + $0x18] sm:$0x1] %vm826_vm9, %v825_v60  }
 0x160   :  { %834 = vst.msk [vmem:[#allocation0] sm:$0x1] %vm833_vm10, %v832_v61  }
 0x162   :  { %v838_v62 = vpop.permute.xlu0 %837   ;;  %v845_v63 = vpop.permute.xlu1 %844  }
 0x163   :  { %841 = vst.msk [vmem:[#allocation0 + $0x10] sm:$0x1] %vm839_vm11, %v838_v62  }
 0x164   :  { %848 = vst.msk [vmem:[#allocation0 + $0x20] sm:$0x1] %vm846_vm12, %v845_v63  }
 0x166   :  { %v852_v0 = vpop.permute.xlu0 %851   ;;  %v859_v1 = vpop.permute.xlu1 %858  }
 0x167   :  { %855 = vst.msk [vmem:[#allocation0 + $0x8] sm:$0x1] %vm853_vm13, %v852_v0  }
 0x168   :  { %862 = vst.msk [vmem:[#allocation0 + $0x18] sm:$0x1] %vm860_vm14, %v859_v1  }
 0x16a   :  { %v866_v2 = vpop.permute.xlu0 %865   ;;  %v872_v3 = vpop.permute.xlu1 %871  }
 0x16b   :  { %868 = vst.msk [vmem:[#allocation0] sm:$0x1] %vm867_vm15, %v866_v2  }
 0x16c   :  { %875 = vst.msk [vmem:[#allocation0 + $0x10] sm:$0x1] %vm873_vm0, %v872_v3  }
 0x16e   :  { %v879_v4 = vpop.permute.xlu0 %878   ;;  %v886_v5 = vpop.permute.xlu1 %885  }
 0x16f   :  { %882 = vst.msk [vmem:[#allocation0 + $0x20] sm:$0x1] %vm880_vm1, %v879_v4  }
 0x170   :  { %889 = vst.msk [vmem:[#allocation0 + $0x8] sm:$0x1] %vm887_vm2, %v886_v5  }
 0x172   :  { %v900_v6 = vld [vmem:[#allocation0] sm:$0x1]  ;;  %v893_v7 = vpop.permute.xlu0 %892  }
 0x173   :  { %902 = vst [vmem:[%s1748_s1] sm:$0x1] %v900_v6  ;;  %v909_v8 = vld [vmem:[#allocation0 + $0x10] sm:$0x1]  ;;  %896 = vst.msk [vmem:[#allocation0 + $0x18] sm:$0x1] %vm894_vm3, %v893_v7  }
 0x174   :  { %1061 = vst [vmem:[%s1748_s1 + $0x2] sm:$0x1] %v909_v8 }
 0x176   :  { %v921_v9 = vld [vmem:[#allocation0 + $0x20] sm:$0x1] }
 0x177   :  { %1063 = vst [vmem:[%s1748_s1 + $0x4] sm:$0x1] %v921_v9  ;;  %v904_v10 = vld [vmem:[#allocation0 + $0x8] sm:$0x1] }
 0x178   :  { %1060 = vst [vmem:[%s1748_s1 + $0x1] sm:$0x1] %v904_v10 }
 0x17a   :  { %v915_v11 = vld [vmem:[#allocation0 + $0x18] sm:$0x1] }
 0x17b   :  { %1062 = vst [vmem:[%s1748_s1 + $0x3] sm:$0x1] %v915_v11 }

// kernel: column_moments.1
= control target key start
LH: loop header
LB: loop body
LE: loop exit
PB: predicated region body
PF: predicated region fallthrough
CT: control target
= control target key end

     0   :  { %s521_s12 = smov 0   ;;  %s523_s13 = smov 0   ;;  %s584_s0 = inlined_call_operand.vmem [shape: f32[6,8,640], index: 0, kind: input, shape index: {}]   ;;  %s585_s1 = inlined_call_operand.vmem [shape: f32[1,640], index: 1, kind: input, shape index: {}]   ;;  %s586_s2 = inlined_call_operand.vmem [shape: f32[2,8,640], index: 2, kind: output, shape index: {0}]   ;;  %s587_s3 = inlined_call_operand.vmem [shape: f32[2,8,640], index: 3, kind: output, shape index: {1}]  }
   0x1   :  { %s525_s14 = smov 0  }
   0x2 LB: > { %s26_s15 = sadd.s32 1, %s495_s13  ;;  %p444_p0 = scmp.ge.s32.totalorder %s499_s14, 1  ;;  %s499_s14 = sphi %s525_s14, %s14_s14   ;;  %s495_s13 = sphi %s523_s13, %s589_s13   ;;  %s491_s12 = sphi %s521_s12, %s588_s12  }
   0x3   : > { %p28_p1 = scmp.ge.s32.totalorder %s26_s15, 2  ;;  %p158_p2 = scmp.lt.s32.totalorder %s499_s14, 3 }
   0x5   : > { %s591_s15 = smov (%p28_p1, %s26_s15), 0  ;;  %p159_p3 = pnand %p444_p0, %p158_p2 }
   0x6   : > { %s190_s16 = smul.u32 (!%p159_p3), 3, %s491_s12  ;;  %v239_v0 = vlaneseq (!%p159_p3)  ;;  %p198_p5 = scmp.lt.s32.totalorder (!%p159_p3), %s491_s12, 1  ;;  %v237_v2 = vld [vmem:[%s585_s1] sm:$0x1f] (!%p159_p3) }
   0x7   : > { %162 = sbr.rel (%p159_p3) target bundleno = 37 (0x25), region = 28 }
   0x8   : > { %v240_v1 = vshrl.u32 (!%p159_p3), %v239_v0, 7  ;;  %p191_p4 = scmp.lt.s32.totalorder (!%p159_p3), %s190_s16, 5 }
   0xa   : > { %v241_v3 = vsub.s32 (!%p159_p3), 0, %v240_v1  ;;  %v245_v4 = vsub.s32 (!%p159_p3), 1, %v240_v1  ;;  %v249_v5 = vsub.s32 (!%p159_p3), 2, %v240_v1  ;;  %v253_v6 = vsub.s32 (!%p159_p3), 3, %v240_v1 }
   0xb   : > { %v257_v8 = vsub.s32 (!%p159_p3), 4, %v240_v1 }
   0xc   : > { %v242_v7 = vrot.slane (!%p159_p3), %v237_v2, %v241_v3  ;;  %v246_v9 = vrot.slane (!%p159_p3), %v237_v2, %v245_v4  ;;  %v250_v10 = vrot.slane (!%p159_p3), %v237_v2, %v249_v5  ;;  %v254_v14 = vrot.slane (!%p159_p3), %v237_v2, %v253_v6 }
   0xd   : > { %v258_v20 = vrot.slane (!%p159_p3), %v237_v2, %v257_v8 }
   0xe   : > { %s593_s16 = smov (!%p191_p4, %s190_s16), 5  ;;  %s595_s12 = smov (!%p198_p5, %s491_s12), 1 }
   0xf   : > { %s450_s19 = smul.u32 40, %s593_s16 }
  0x10   : > { %s451_s23 = smul.u32 40, %s595_s12 }
  0x11   : > { %s547_s22 = scalar_lea.vmem %s584_s0, %s450_s19 }
  0x12   : > { %v222_v11 = vld [vmem:[%s547_s22] sm:$0xff]  ;;  %v227_v12 = vld [vmem:[%s547_s22 + $0x28] sm:$0xff]  ;;  %v232_v13 = vld [vmem:[%s547_s22 + $0x50] sm:$0xff]  ;;  %s202_s26 = scalar_lea.vmem %s586_s2, %s451_s23  ;;  %s207_s29 = scalar_lea.vmem %s587_s3, %s451_s23 }
  0x13   : > { %v264_v15 = vsub.f32 %v222_v11, %v242_v7  ;;  %v269_v16 = vsub.f32 %v227_v12, %v242_v7  ;;  %v223_v17 = vld [vmem:[%s547_s22 + $0x8] sm:$0xff]  ;;  %v228_v18 = vld [vmem:[%s547_s22 + $0x30] sm:$0xff]  ;;  %v233_v19 = vld [vmem:[%s547_s22 + $0x58] sm:$0xff]  ;;  %v274_v21 = vsub.f32 %v232_v13, %v242_v7 }
  0x14   : > { %v265_v22 = vsub.f32 %v223_v17, %v246_v9  ;;  %v270_v23 = vsub.f32 %v228_v18, %v246_v9  ;;  %v275_v24 = vsub.f32 %v233_v19, %v246_v9  ;;  %v224_v25 = vld [vmem:[%s547_s22 + $0x10] sm:$0xff]  ;;  %v229_v26 = vld [vmem:[%s547_s22 + $0x38] sm:$0xff]  ;;  %v234_v27 = vld [vmem:[%s547_s22 + $0x60] sm:$0xff] }
  0x15   : > { %v284_v28 = vadd.f32 %v269_v16, %v264_v15  ;;  %v266_v29 = vsub.f32 %v224_v25, %v250_v10  ;;  %v271_v30 = vsub.f32 %v229_v26, %v250_v10  ;;  %v276_v31 = vsub.f32 %v234_v27, %v250_v10  ;;  %v225_v32 = vld [vmem:[%s547_s22 + $0x18] sm:$0xff]  ;;  %v230_v33 = vld [vmem:[%s547_s22 + $0x40] sm:$0xff]  ;;  %v235_v34 = vld [vmem:[%s547_s22 + $0x68] sm:$0xff] }
  0x16   : > { %v286_v35 = vadd.f32 %v270_v23, %v265_v22  ;;  %v267_v36 = vsub.f32 %v225_v32, %v254_v14  ;;  %v272_v37 = vsub.f32 %v230_v33, %v254_v14  ;;  %v277_v38 = vsub.f32 %v235_v34, %v254_v14  ;;  %v226_v39 = vld [vmem:[%s547_s22 + $0x20] sm:$0xff]  ;;  %v231_v40 = vld [vmem:[%s547_s22 + $0x48] sm:$0xff]  ;;  %v236_v41 = vld [vmem:[%s547_s22 + $0x70] sm:$0xff] }
  0x17   : > { %v285_v42 = vadd.f32 %v284_v28, %v274_v21  ;;  %v288_v43 = vadd.f32 %v271_v30, %v266_v29  ;;  %v268_v44 = vsub.f32 %v226_v39, %v258_v20  ;;  %v273_v45 = vsub.f32 %v231_v40, %v258_v20 }
  0x18   : > { %v287_v46 = vadd.f32 %v286_v35, %v275_v24  ;;  %v290_v47 = vadd.f32 %v272_v37, %v267_v36  ;;  %v278_v48 = vsub.f32 %v236_v41, %v258_v20  ;;  %v309_v49 = vmul.f32 %v264_v15, %v264_v15 }
  0x19   : > { %v289_v50 = vadd.f32 %v288_v43, %v276_v31  ;;  %v292_v51 = vadd.f32 %v273_v45, %v268_v44  ;;  %v314_v52 = vmul.f32 %v269_v16, %v269_v16  ;;  %v319_v54 = vmul.f32 %v274_v21, %v274_v21  ;;  %299 = vst [vmem:[%s202_s26] sm:$0xff] %v285_v42 }
  0x1a   : > { %v291_v53 = vadd.f32 %v290_v47, %v277_v38  ;;  %v310_v55 = vmul.f32 %v265_v22, %v265_v22  ;;  %v315_v58 = vmul.f32 %v270_v23, %v270_v23  ;;  %300 = vst [vmem:[%s202_s26 + $0x8] sm:$0xff] %v287_v46  ;;  %v320_v59 = vmul.f32 %v275_v24, %v275_v24 }
  0x1b   : > { %v293_v56 = vadd.f32 %v292_v51, %v278_v48  ;;  %v324_v57 = vadd.f32 %v314_v52, %v309_v49  ;;  %v311_v60 = vmul.f32 %v266_v29, %v266_v29  ;;  %v316_v61 = vmul.f32 %v271_v30, %v271_v30  ;;  %301 = vst [vmem:[%s202_s26 + $0x10] sm:$0xff] %v289_v50 }
  0x1c   : > { %v326_v63 = vadd.f32 %v315_v58, %v310_v55  ;;  %v321_v0 = vmul.f32 %v276_v31, %v276_v31  ;;  %302 = vst [vmem:[%s202_s26 + $0x18] sm:$0xff] %v291_v53  ;;  %v312_v2 = vmul.f32 %v267_v36, %v267_v36  ;;  %v317_v3 = vmul.f32 %v272_v37, %v272_v37 }
  0x1d   : > { %v325_v62 = vadd.f32 %v324_v57, %v319_v54  ;;  %v328_v1 = vadd.f32 %v316_v61, %v311_v60  ;;  %v322_v4 = vmul.f32 %v277_v38, %v277_v38  ;;  %303 = vst [vmem:[%s202_s26 + $0x20] sm:$0xff] %v293_v56  ;;  %v313_v6 = vmul.f32 %v268_v44, %v268_v44 }
  0x1e   : > { %v327_v5 = vadd.f32 %v326_v63, %v320_v59  ;;  %v318_v7 = vmul.f32 %v273_v45, %v273_v45  ;;  %v330_v9 = vadd.f32 %v317_v3, %v312_v2  ;;  %v323_v10 = vmul.f32 %v278_v48, %v278_v48 }
  0x1f   : > { %v329_v8 = vadd.f32 %v328_v1, %v321_v0  ;;  %339 = vst [vmem:[%s207_s29] sm:$0xff] %v325_v62 }
  0x20   : > { %v332_v11 = vadd.f32 %v318_v7, %v313_v6  ;;  %v331_v12 = vadd.f32 %v330_v9, %v322_v4  ;;  %340 = vst [vmem:[%s207_s29 + $0x8] sm:$0xff] %v327_v5 }
  0x21   : > { %341 = vst [vmem:[%s207_s29 + $0x10] sm:$0xff] %v329_v8 }
  0x22   : > { %v333_v13 = vadd.f32 %v332_v11, %v323_v10  ;;  %342 = vst [vmem:[%s207_s29 + $0x18] sm:$0xff] %v331_v12 }
  0x24   : > { %343 = vst [vmem:[%s207_s29 + $0x20] sm:$0xff] %v333_v13 }
  0x25 PF: > { %s14_s14 = sadd.s32 1, %s499_s14   ;;  %s588_s12 = smov %s495_s13 }
  0x26   : > { %p11_p6 = scmp.ge.s32.totalorder %s14_s14, 4   ;;  %s589_s13 = smov %s591_s15 }
  0x28   :  { %13 = sbr.rel (!%p11_p6) target bundleno = 2 (0x2), region = 74 }

</bundles_post_ra>
